<compile_context>
chip_gen: v5e
topology: v5e:2x2
jax: 0.10.0
libtpu: 0.0.40
codegen_flags: <defaults>
</compile_context>

<pallas_src>
import jax
import jax.numpy as jnp
from jax import lax
from jax.experimental import pallas as pl
from jax.experimental.pallas import tpu as pltpu


def _layernorm(x, gamma, beta, eps=1e-5):
    # fused single-pass statistics: var = E[x^2] - mu^2 (clamped at 0)
    mu = jnp.mean(x, axis=-1, keepdims=True)
    ms = jnp.mean(x * x, axis=-1, keepdims=True)
    var = jnp.maximum(ms - mu * mu, 0.0)
    return (x - mu) * lax.rsqrt(var + eps) * gamma + beta


def gcn_kernel(x_ref, a_ref,
               g1_ref, be1_ref, w1_ref, b1_ref,
               g2_ref, be2_ref, w2_ref, b2_ref,
               o_ref):
    x = x_ref[...]                                   # (bt, N, D) f32
    a = a_ref[...].astype(jnp.bfloat16)              # (bt, N, N) bf16 for MXU

    # norm1 + (eval-mode) dropout == identity
    xn = _layernorm(x, g1_ref[0], be1_ref[0])

    # layer1, reassociated: relu(A @ (xn @ W1) + b1)   (exact algebraically)
    t1 = jnp.einsum("bnd,dh->bnh",
                    xn.astype(jnp.bfloat16), w1_ref[...].astype(jnp.bfloat16),
                    preferred_element_type=jnp.float32)
    h = jnp.einsum("bij,bjh->bih", a, t1.astype(jnp.bfloat16),
                   preferred_element_type=jnp.float32) + b1_ref[0]
    h = jnp.maximum(h, 0.0)

    # norm2 + (eval-mode) dropout == identity
    hn = _layernorm(h, g2_ref[0], be2_ref[0])

    # layer2, reassociated: relu(A @ (hn @ W2) + b2)
    t2 = jnp.einsum("bnh,ho->bno",
                    hn.astype(jnp.bfloat16), w2_ref[...].astype(jnp.bfloat16),
                    preferred_element_type=jnp.float32)
    h2 = jnp.einsum("bij,bjo->bio", a, t2.astype(jnp.bfloat16),
                    preferred_element_type=jnp.float32) + b2_ref[0]
    o_ref[...] = jnp.maximum(h2, 0.0)


def _round_up(v, m):
    return (v + m - 1) // m * m


def _pick_block_b(B, N, D, o_pad):
    """Largest divisor of B that keeps >= 2 grid steps (when B >= 2) and whose
    double-buffered per-step activation footprint stays well inside VMEM."""
    budget = 24 << 20                        # bytes for pipelined activations
    per_elem = 2 * 4 * N * (N + D + o_pad)   # A + x + out, double-buffered f32
    best = 1
    for bt in range(1, B + 1):
        if B % bt:
            continue
        if bt * per_elem > budget:
            break
        if B >= 2 and (B // bt) < 2:
            break
        best = bt
    return best


def _build_and_call(x, A, params, bt, o_pad, single_buffer_weights):
    B, N, D = x.shape
    H = params["w1"].shape[1]
    O = params["w2"].shape[1]

    # zero-pad layer2 output dim to a lane-dense width (results unchanged)
    w2p = jnp.pad(params["w2"], ((0, 0), (0, o_pad - O)))
    b2p = jnp.pad(params["b2"], ((0, 0), (0, o_pad - O)))

    if single_buffer_weights:
        def const_spec(shape):
            return pl.BlockSpec(shape, lambda b: (0,) * len(shape),
                                pipeline_mode=pl.Buffered(1))
    else:
        def const_spec(shape):
            return pl.BlockSpec(shape, lambda b: (0,) * len(shape))

    # rough VMEM budget (activations double-buffered + weights) with headroom
    act_bytes = 2 * 4 * bt * N * (N + D + H + o_pad)
    wgt_bytes = 4 * (D * H + H * o_pad + 2 * D + 2 * H + 2 * o_pad)
    wgt_bytes *= 1 if single_buffer_weights else 2
    vmem_limit = int(min(max(3 * (act_bytes + wgt_bytes) + (8 << 20),
                             32 << 20), 56 << 20))

    out = pl.pallas_call(
        gcn_kernel,
        out_shape=jax.ShapeDtypeStruct((B, N, o_pad), jnp.float32),
        grid=(B // bt,),
        in_specs=[
            pl.BlockSpec((bt, N, D), lambda b: (b, 0, 0)),   # x
            pl.BlockSpec((bt, N, N), lambda b: (b, 0, 0)),   # A
            const_spec((1, D)),                              # norm1 gamma
            const_spec((1, D)),                              # norm1 beta
            const_spec((D, H)),                              # layer1 weight (in,out)
            const_spec((1, H)),                              # layer1 bias
            const_spec((1, H)),                              # norm2 gamma
            const_spec((1, H)),                              # norm2 beta
            const_spec((H, o_pad)),                          # layer2 weight (padded)
            const_spec((1, o_pad)),                          # layer2 bias (padded)
        ],
        out_specs=pl.BlockSpec((bt, N, o_pad), lambda b: (b, 0, 0)),
        compiler_params=pltpu.CompilerParams(
            dimension_semantics=("parallel",),
            vmem_limit_bytes=vmem_limit),
    )(x, A,
      params["g1"], params["be1"], params["w1"], params["b1"],
      params["g2"], params["be2"], w2p, b2p)
    out = jax.block_until_ready(out)   # surface any lowering/runtime issue here
    return out[..., :O]


def gcn_forward(x, A, params, *, block_b=None):
    """x: (B, N, D) f32, A: (B, N, N) f32 (row-stochastic adjacency)."""
    B, N, D = x.shape
    O = params["w2"].shape[1]
    o_pad = _round_up(O, 128)          # lane-dense output stores
    bt = block_b if block_b is not None else _pick_block_b(B, N, D, o_pad)
    # TODO(synk): for very large N (A tile blowing past v7x's 64 MiB VMEM),
    # split into two row-tiled pallas_calls (layer1, then layer2), since the
    # second propagation A @ h needs the full hidden state across all rows.
    try:
        return _build_and_call(x, A, params, bt, o_pad,
                               single_buffer_weights=True)
    except Exception:
        # pipeline_mode=pl.Buffered(1) unsupported on this JAX version.
        return _build_and_call(x, A, params, bt, o_pad,
                               single_buffer_weights=False)


def init_params(key, in_ch, out_ch):
    hid = in_ch // 2
    k1, k2, k3, k4 = jax.random.split(key, 4)
    s1 = 1.0 / jnp.sqrt(in_ch)
    s2 = 1.0 / jnp.sqrt(hid)
    return {
        # LayerNorm(in_ch)
        "g1": jnp.ones((1, in_ch), jnp.float32),
        "be1": jnp.zeros((1, in_ch), jnp.float32),
        # Linear(in_ch, in_ch//2) stored as (in, out)
        "w1": jax.random.uniform(k1, (in_ch, hid), jnp.float32, -s1, s1),
        "b1": jax.random.uniform(k2, (1, hid), jnp.float32, -s1, s1),
        # LayerNorm(in_ch//2)
        "g2": jnp.ones((1, hid), jnp.float32),
        "be2": jnp.zeros((1, hid), jnp.float32),
        # Linear(in_ch//2, out_ch) stored as (in, out)
        "w2": jax.random.uniform(k3, (hid, out_ch), jnp.float32, -s2, s2),
        "b2": jax.random.uniform(k4, (1, out_ch), jnp.float32, -s2, s2),
    }


def gcn_reference(x, A, p):
    """Plain JAX (f32) reference for the same forward pass."""
    def ln(v, g, b, eps=1e-5):
        mu = jnp.mean(v, -1, keepdims=True)
        var = jnp.mean((v - mu) ** 2, -1, keepdims=True)
        return (v - mu) / jnp.sqrt(var + eps) * g + b
    h = ln(x, p["g1"][0], p["be1"][0])
    h = jnp.maximum(jnp.einsum("bij,bjd->bid", A, h) @ p["w1"] + p["b1"][0], 0.0)
    h = ln(h, p["g2"][0], p["be2"][0])
    h = jnp.maximum(jnp.einsum("bij,bjd->bid", A, h) @ p["w2"] + p["b2"][0], 0.0)
    return h


if __name__ == "__main__":
    B, N, in_ch, out_ch = 2, 8, 32, 16

    key = jax.random.PRNGKey(0)
    kx, ka, kp = jax.random.split(key, 3)

    x = jax.random.normal(kx, (B, N, in_ch), jnp.float32)
    # A: row-stochastic adjacency (softmax of random logits), shape BxNxN
    A = jax.nn.softmax(jax.random.normal(ka, (B, N, N), jnp.float32), axis=-1)

    params = init_params(kp, in_ch, out_ch)

    out = gcn_forward(x, A, params)
    out = jax.block_until_ready(out)

    ref = gcn_reference(x, A, params)
    assert out.shape == (B, N, out_ch)
    # bf16 MXU inputs with f32 accumulation -> slightly looser tolerance.
    assert jnp.allclose(out, ref, atol=5e-2, rtol=5e-2), "mismatch vs reference"

    print("KERNEL_OK")
</pallas_src>

<mosaic_0001>
module attributes {stable_mosaic.version = 11 : i64} {
  func.func @gcn_kernel(%arg0: i32, %arg1: memref<1x8x32xf32, #tpu.memory_space<vmem>>, %arg2: memref<1x8x8xf32, #tpu.memory_space<vmem>>, %arg3: memref<1x32xf32, #tpu.memory_space<vmem>>, %arg4: memref<1x32xf32, #tpu.memory_space<vmem>>, %arg5: memref<32x16xf32, #tpu.memory_space<vmem>>, %arg6: memref<1x16xf32, #tpu.memory_space<vmem>>, %arg7: memref<1x16xf32, #tpu.memory_space<vmem>>, %arg8: memref<1x16xf32, #tpu.memory_space<vmem>>, %arg9: memref<16x128xf32, #tpu.memory_space<vmem>>, %arg10: memref<1x128xf32, #tpu.memory_space<vmem>>, %arg11: memref<1x8x128xf32, #tpu.memory_space<vmem>>) attributes {dimension_semantics = [#tpu.dimension_semantics<parallel>], iteration_bounds = array<i64: 2>, scalar_prefetch = 0 : i64, scratch_operands = 0 : i64, tpu.core_type = #tpu.core_type<tc>, window_params = [{transform_indices = @transform_0, window_bounds = array<i64: 1, 8, 32>}, {transform_indices = @transform_1, window_bounds = array<i64: 1, 8, 8>}, {pipeline_mode = #tpu.pipeline_mode<synchronous>, transform_indices = @transform_2, window_bounds = array<i64: 1, 32>}, {pipeline_mode = #tpu.pipeline_mode<synchronous>, transform_indices = @transform_3, window_bounds = array<i64: 1, 32>}, {pipeline_mode = #tpu.pipeline_mode<synchronous>, transform_indices = @transform_4, window_bounds = array<i64: 32, 16>}, {pipeline_mode = #tpu.pipeline_mode<synchronous>, transform_indices = @transform_5, window_bounds = array<i64: 1, 16>}, {pipeline_mode = #tpu.pipeline_mode<synchronous>, transform_indices = @transform_6, window_bounds = array<i64: 1, 16>}, {pipeline_mode = #tpu.pipeline_mode<synchronous>, transform_indices = @transform_7, window_bounds = array<i64: 1, 16>}, {pipeline_mode = #tpu.pipeline_mode<synchronous>, transform_indices = @transform_8, window_bounds = array<i64: 16, 128>}, {pipeline_mode = #tpu.pipeline_mode<synchronous>, transform_indices = @transform_9, window_bounds = array<i64: 1, 128>}, {transform_indices = @transform_10, window_bounds = array<i64: 1, 8, 128>}]} {
    %c0 = arith.constant 0 : index
    %c0_0 = arith.constant 0 : index
    %c0_1 = arith.constant 0 : index
    %0 = vector.load %arg1[%c0, %c0_0, %c0_1] : memref<1x8x32xf32, #tpu.memory_space<vmem>>, vector<1x8x32xf32>
    %c0_2 = arith.constant 0 : index
    %c0_3 = arith.constant 0 : index
    %c0_4 = arith.constant 0 : index
    %1 = vector.load %arg2[%c0_2, %c0_3, %c0_4] : memref<1x8x8xf32, #tpu.memory_space<vmem>>, vector<1x8x8xf32>
    %2 = arith.truncf %1 : vector<1x8x8xf32> to vector<1x8x8xbf16>
    %c0_5 = arith.constant 0 : index
    %c0_6 = arith.constant 0 : index
    %3 = vector.load %arg3[%c0_5, %c0_6] : memref<1x32xf32, #tpu.memory_space<vmem>>, vector<1x32xf32>
    %4 = vector.shape_cast %3 : vector<1x32xf32> to vector<32xf32>
    %c0_7 = arith.constant 0 : index
    %c0_8 = arith.constant 0 : index
    %5 = vector.load %arg4[%c0_7, %c0_8] : memref<1x32xf32, #tpu.memory_space<vmem>>, vector<1x32xf32>
    %6 = vector.shape_cast %5 : vector<1x32xf32> to vector<32xf32>
    %cst = arith.constant dense<0.000000e+00> : vector<1x8xf32>
    %7 = vector.multi_reduction <add>, %0, %cst [2] : vector<1x8x32xf32> to vector<1x8xf32>
    %8 = vector.shape_cast %7 : vector<1x8xf32> to vector<1x8x1xf32>
    %cst_9 = arith.constant 3.200000e+01 : f32
    %9 = vector.broadcast %cst_9 : f32 to vector<1x8x1xf32>
    %10 = arith.divf %8, %9 : vector<1x8x1xf32>
    %11 = arith.mulf %0, %0 : vector<1x8x32xf32>
    %cst_10 = arith.constant dense<0.000000e+00> : vector<1x8xf32>
    %12 = vector.multi_reduction <add>, %11, %cst_10 [2] : vector<1x8x32xf32> to vector<1x8xf32>
    %13 = vector.shape_cast %12 : vector<1x8xf32> to vector<1x8x1xf32>
    %cst_11 = arith.constant 3.200000e+01 : f32
    %14 = vector.broadcast %cst_11 : f32 to vector<1x8x1xf32>
    %15 = arith.divf %13, %14 : vector<1x8x1xf32>
    %16 = arith.mulf %10, %10 : vector<1x8x1xf32>
    %17 = arith.subf %15, %16 : vector<1x8x1xf32>
    %cst_12 = arith.constant 0.000000e+00 : f32
    %18 = vector.broadcast %cst_12 : f32 to vector<1x8x1xf32>
    %19 = arith.maximumf %17, %18 : vector<1x8x1xf32>
    %20 = vector.broadcast %10 : vector<1x8x1xf32> to vector<1x8x32xf32>
    %21 = arith.subf %0, %20 : vector<1x8x32xf32>
    %cst_13 = arith.constant 9.99999974E-6 : f32
    %22 = vector.broadcast %cst_13 : f32 to vector<1x8x1xf32>
    %23 = arith.addf %19, %22 : vector<1x8x1xf32>
    %24 = math.rsqrt %23 : vector<1x8x1xf32>
    %25 = vector.broadcast %24 : vector<1x8x1xf32> to vector<1x8x32xf32>
    %26 = arith.mulf %21, %25 : vector<1x8x32xf32>
    %27 = vector.shape_cast %4 : vector<32xf32> to vector<1x1x32xf32>
    %28 = vector.broadcast %27 : vector<1x1x32xf32> to vector<1x8x32xf32>
    %29 = arith.mulf %26, %28 : vector<1x8x32xf32>
    %30 = vector.shape_cast %6 : vector<32xf32> to vector<1x1x32xf32>
    %31 = vector.broadcast %30 : vector<1x1x32xf32> to vector<1x8x32xf32>
    %32 = arith.addf %29, %31 : vector<1x8x32xf32>
    %33 = arith.truncf %32 : vector<1x8x32xf32> to vector<1x8x32xbf16>
    %c0_14 = arith.constant 0 : index
    %c0_15 = arith.constant 0 : index
    %34 = vector.load %arg5[%c0_14, %c0_15] : memref<32x16xf32, #tpu.memory_space<vmem>>, vector<32x16xf32>
    %35 = arith.truncf %34 : vector<32x16xf32> to vector<32x16xbf16>
    "tpu.trace_start"() <{level = 10 : i32, message = "bnd,dh->bnh"}> : () -> ()
    %cst_16 = arith.constant dense<0.000000e+00> : vector<1x8x16xf32>
    %36 = tpu.matmul %33, %35, %cst_16 {dimension_numbers = #tpu.dot_dimension_numbers<[2], [0], [0, 1], [1], [0, 0, 0, 1, 1, 1], [], []>} : vector<1x8x32xbf16>, vector<32x16xbf16>, vector<1x8x16xf32> -> vector<1x8x16xf32>
    "tpu.trace_stop"() : () -> ()
    %37 = arith.truncf %36 : vector<1x8x16xf32> to vector<1x8x16xbf16>
    "tpu.trace_start"() <{level = 10 : i32, message = "bij,bjh->bih"}> : () -> ()
    %cst_17 = arith.constant dense<0.000000e+00> : vector<1x8x16xf32>
    %38 = tpu.matmul %2, %37, %cst_17 {dimension_numbers = #tpu.dot_dimension_numbers<[2], [1], [1], [2], [0, 0, 0, 1, 1, 2], [0], [0]>} : vector<1x8x8xbf16>, vector<1x8x16xbf16>, vector<1x8x16xf32> -> vector<1x8x16xf32>
    "tpu.trace_stop"() : () -> ()
    %c0_18 = arith.constant 0 : index
    %c0_19 = arith.constant 0 : index
    %39 = vector.load %arg6[%c0_18, %c0_19] : memref<1x16xf32, #tpu.memory_space<vmem>>, vector<1x16xf32>
    %40 = vector.shape_cast %39 : vector<1x16xf32> to vector<16xf32>
    %41 = vector.shape_cast %40 : vector<16xf32> to vector<1x1x16xf32>
    %42 = vector.broadcast %41 : vector<1x1x16xf32> to vector<1x8x16xf32>
    %43 = arith.addf %38, %42 : vector<1x8x16xf32>
    %cst_20 = arith.constant 0.000000e+00 : f32
    %44 = vector.broadcast %cst_20 : f32 to vector<1x8x16xf32>
    %45 = arith.maximumf %43, %44 : vector<1x8x16xf32>
    %c0_21 = arith.constant 0 : index
    %c0_22 = arith.constant 0 : index
    %46 = vector.load %arg7[%c0_21, %c0_22] : memref<1x16xf32, #tpu.memory_space<vmem>>, vector<1x16xf32>
    %47 = vector.shape_cast %46 : vector<1x16xf32> to vector<16xf32>
    %c0_23 = arith.constant 0 : index
    %c0_24 = arith.constant 0 : index
    %48 = vector.load %arg8[%c0_23, %c0_24] : memref<1x16xf32, #tpu.memory_space<vmem>>, vector<1x16xf32>
    %49 = vector.shape_cast %48 : vector<1x16xf32> to vector<16xf32>
    %cst_25 = arith.constant dense<0.000000e+00> : vector<1x8xf32>
    %50 = vector.multi_reduction <add>, %45, %cst_25 [2] : vector<1x8x16xf32> to vector<1x8xf32>
    %51 = vector.shape_cast %50 : vector<1x8xf32> to vector<1x8x1xf32>
    %cst_26 = arith.constant 1.600000e+01 : f32
    %52 = vector.broadcast %cst_26 : f32 to vector<1x8x1xf32>
    %53 = arith.divf %51, %52 : vector<1x8x1xf32>
    %54 = arith.mulf %45, %45 : vector<1x8x16xf32>
    %cst_27 = arith.constant dense<0.000000e+00> : vector<1x8xf32>
    %55 = vector.multi_reduction <add>, %54, %cst_27 [2] : vector<1x8x16xf32> to vector<1x8xf32>
    %56 = vector.shape_cast %55 : vector<1x8xf32> to vector<1x8x1xf32>
    %cst_28 = arith.constant 1.600000e+01 : f32
    %57 = vector.broadcast %cst_28 : f32 to vector<1x8x1xf32>
    %58 = arith.divf %56, %57 : vector<1x8x1xf32>
    %59 = arith.mulf %53, %53 : vector<1x8x1xf32>
    %60 = arith.subf %58, %59 : vector<1x8x1xf32>
    %cst_29 = arith.constant 0.000000e+00 : f32
    %61 = vector.broadcast %cst_29 : f32 to vector<1x8x1xf32>
    %62 = arith.maximumf %60, %61 : vector<1x8x1xf32>
    %63 = vector.broadcast %53 : vector<1x8x1xf32> to vector<1x8x16xf32>
    %64 = arith.subf %45, %63 : vector<1x8x16xf32>
    %cst_30 = arith.constant 9.99999974E-6 : f32
    %65 = vector.broadcast %cst_30 : f32 to vector<1x8x1xf32>
    %66 = arith.addf %62, %65 : vector<1x8x1xf32>
    %67 = math.rsqrt %66 : vector<1x8x1xf32>
    %68 = vector.broadcast %67 : vector<1x8x1xf32> to vector<1x8x16xf32>
    %69 = arith.mulf %64, %68 : vector<1x8x16xf32>
    %70 = vector.shape_cast %47 : vector<16xf32> to vector<1x1x16xf32>
    %71 = vector.broadcast %70 : vector<1x1x16xf32> to vector<1x8x16xf32>
    %72 = arith.mulf %69, %71 : vector<1x8x16xf32>
    %73 = vector.shape_cast %49 : vector<16xf32> to vector<1x1x16xf32>
    %74 = vector.broadcast %73 : vector<1x1x16xf32> to vector<1x8x16xf32>
    %75 = arith.addf %72, %74 : vector<1x8x16xf32>
    %76 = arith.truncf %75 : vector<1x8x16xf32> to vector<1x8x16xbf16>
    %c0_31 = arith.constant 0 : index
    %c0_32 = arith.constant 0 : index
    %77 = vector.load %arg9[%c0_31, %c0_32] : memref<16x128xf32, #tpu.memory_space<vmem>>, vector<16x128xf32>
    %78 = arith.truncf %77 : vector<16x128xf32> to vector<16x128xbf16>
    "tpu.trace_start"() <{level = 10 : i32, message = "bnh,ho->bno"}> : () -> ()
    %cst_33 = arith.constant dense<0.000000e+00> : vector<1x8x128xf32>
    %79 = tpu.matmul %76, %78, %cst_33 {dimension_numbers = #tpu.dot_dimension_numbers<[2], [0], [0, 1], [1], [0, 0, 0, 1, 1, 1], [], []>} : vector<1x8x16xbf16>, vector<16x128xbf16>, vector<1x8x128xf32> -> vector<1x8x128xf32>
    "tpu.trace_stop"() : () -> ()
    %80 = arith.truncf %79 : vector<1x8x128xf32> to vector<1x8x128xbf16>
    "tpu.trace_start"() <{level = 10 : i32, message = "bij,bjo->bio"}> : () -> ()
    %cst_34 = arith.constant dense<0.000000e+00> : vector<1x8x128xf32>
    %81 = tpu.matmul %2, %80, %cst_34 {dimension_numbers = #tpu.dot_dimension_numbers<[2], [1], [1], [2], [0, 0, 0, 1, 1, 2], [0], [0]>} : vector<1x8x8xbf16>, vector<1x8x128xbf16>, vector<1x8x128xf32> -> vector<1x8x128xf32>
    "tpu.trace_stop"() : () -> ()
    %c0_35 = arith.constant 0 : index
    %c0_36 = arith.constant 0 : index
    %82 = vector.load %arg10[%c0_35, %c0_36] : memref<1x128xf32, #tpu.memory_space<vmem>>, vector<1x128xf32>
    %83 = vector.shape_cast %82 : vector<1x128xf32> to vector<128xf32>
    %84 = vector.shape_cast %83 : vector<128xf32> to vector<1x1x128xf32>
    %85 = vector.broadcast %84 : vector<1x1x128xf32> to vector<1x8x128xf32>
    %86 = arith.addf %81, %85 : vector<1x8x128xf32>
    %cst_37 = arith.constant 0.000000e+00 : f32
    %87 = vector.broadcast %cst_37 : f32 to vector<1x8x128xf32>
    %88 = arith.maximumf %86, %87 : vector<1x8x128xf32>
    %c0_38 = arith.constant 0 : index
    %c0_39 = arith.constant 0 : index
    %c0_40 = arith.constant 0 : index
    %89 = vector.load %arg11[%c0_38, %c0_39, %c0_40] : memref<1x8x128xf32, #tpu.memory_space<vmem>>, vector<1x8x128xf32>
    tpu.vector_store %arg11[%c0_38, %c0_39, %c0_40], %88 {strides = array<i32>} : memref<1x8x128xf32, #tpu.memory_space<vmem>>, vector<1x8x128xf32>,
    return
  }
  func.func @transform_0(%arg0: i32) -> (i32, i32, i32) {
    %c0_i32 = arith.constant 0 : i32
    %c0_i32_0 = arith.constant 0 : i32
    %c0_i32_1 = arith.constant 0 : i32
    return %arg0, %c0_i32, %c0_i32_0 : i32, i32, i32
  }
  func.func @transform_1(%arg0: i32) -> (i32, i32, i32) {
    %c0_i32 = arith.constant 0 : i32
    %c0_i32_0 = arith.constant 0 : i32
    %c0_i32_1 = arith.constant 0 : i32
    return %arg0, %c0_i32, %c0_i32_0 : i32, i32, i32
  }
  func.func @transform_2(%arg0: i32) -> (i32, i32) {
    %c0_i32 = arith.constant 0 : i32
    %c0_i32_0 = arith.constant 0 : i32
    %c0_i32_1 = arith.constant 0 : i32
    return %c0_i32, %c0_i32_0 : i32, i32
  }
  func.func @transform_3(%arg0: i32) -> (i32, i32) {
    %c0_i32 = arith.constant 0 : i32
    %c0_i32_0 = arith.constant 0 : i32
    %c0_i32_1 = arith.constant 0 : i32
    return %c0_i32, %c0_i32_0 : i32, i32
  }
  func.func @transform_4(%arg0: i32) -> (i32, i32) {
    %c0_i32 = arith.constant 0 : i32
    %c0_i32_0 = arith.constant 0 : i32
    %c0_i32_1 = arith.constant 0 : i32
    return %c0_i32, %c0_i32_0 : i32, i32
  }
  func.func @transform_5(%arg0: i32) -> (i32, i32) {
    %c0_i32 = arith.constant 0 : i32
    %c0_i32_0 = arith.constant 0 : i32
    %c0_i32_1 = arith.constant 0 : i32
    return %c0_i32, %c0_i32_0 : i32, i32
  }
  func.func @transform_6(%arg0: i32) -> (i32, i32) {
    %c0_i32 = arith.constant 0 : i32
    %c0_i32_0 = arith.constant 0 : i32
    %c0_i32_1 = arith.constant 0 : i32
    return %c0_i32, %c0_i32_0 : i32, i32
  }
  func.func @transform_7(%arg0: i32) -> (i32, i32) {
    %c0_i32 = arith.constant 0 : i32
    %c0_i32_0 = arith.constant 0 : i32
    %c0_i32_1 = arith.constant 0 : i32
    return %c0_i32, %c0_i32_0 : i32, i32
  }
  func.func @transform_8(%arg0: i32) -> (i32, i32) {
    %c0_i32 = arith.constant 0 : i32
    %c0_i32_0 = arith.constant 0 : i32
    %c0_i32_1 = arith.constant 0 : i32
    return %c0_i32, %c0_i32_0 : i32, i32
  }
  func.func @transform_9(%arg0: i32) -> (i32, i32) {
    %c0_i32 = arith.constant 0 : i32
    %c0_i32_0 = arith.constant 0 : i32
    %c0_i32_1 = arith.constant 0 : i32
    return %c0_i32, %c0_i32_0 : i32, i32
  }
  func.func @transform_10(%arg0: i32) -> (i32, i32, i32) {
    %c0_i32 = arith.constant 0 : i32
    %c0_i32_0 = arith.constant 0 : i32
    %c0_i32_1 = arith.constant 0 : i32
    return %arg0, %c0_i32, %c0_i32_0 : i32, i32, i32
  }
}

module attributes {stable_mosaic.version = 11 : i64} {
  func.func @gcn_kernel(%arg0: i32, %arg1: memref<1x8x32xf32, #tpu.memory_space<vmem>>, %arg2: memref<1x8x8xf32, #tpu.memory_space<vmem>>, %arg3: memref<1x32xf32, #tpu.memory_space<vmem>>, %arg4: memref<1x32xf32, #tpu.memory_space<vmem>>, %arg5: memref<32x16xf32, #tpu.memory_space<vmem>>, %arg6: memref<1x16xf32, #tpu.memory_space<vmem>>, %arg7: memref<1x16xf32, #tpu.memory_space<vmem>>, %arg8: memref<1x16xf32, #tpu.memory_space<vmem>>, %arg9: memref<16x128xf32, #tpu.memory_space<vmem>>, %arg10: memref<1x128xf32, #tpu.memory_space<vmem>>, %arg11: memref<1x8x128xf32, #tpu.memory_space<vmem>>) attributes {dimension_semantics = [#tpu.dimension_semantics<parallel>], iteration_bounds = array<i64: 2>, scalar_prefetch = 0 : i64, scratch_operands = 0 : i64, tpu.core_type = #tpu.core_type<tc>, window_params = [{transform_indices = @transform_0, window_bounds = array<i64: 1, 8, 32>}, {transform_indices = @transform_1, window_bounds = array<i64: 1, 8, 8>}, {pipeline_mode = #tpu.pipeline_mode<synchronous>, transform_indices = @transform_2, window_bounds = array<i64: 1, 32>}, {pipeline_mode = #tpu.pipeline_mode<synchronous>, transform_indices = @transform_3, window_bounds = array<i64: 1, 32>}, {pipeline_mode = #tpu.pipeline_mode<synchronous>, transform_indices = @transform_4, window_bounds = array<i64: 32, 16>}, {pipeline_mode = #tpu.pipeline_mode<synchronous>, transform_indices = @transform_5, window_bounds = array<i64: 1, 16>}, {pipeline_mode = #tpu.pipeline_mode<synchronous>, transform_indices = @transform_6, window_bounds = array<i64: 1, 16>}, {pipeline_mode = #tpu.pipeline_mode<synchronous>, transform_indices = @transform_7, window_bounds = array<i64: 1, 16>}, {pipeline_mode = #tpu.pipeline_mode<synchronous>, transform_indices = @transform_8, window_bounds = array<i64: 16, 128>}, {pipeline_mode = #tpu.pipeline_mode<synchronous>, transform_indices = @transform_9, window_bounds = array<i64: 1, 128>}, {transform_indices = @transform_10, window_bounds = array<i64: 1, 8, 128>}]} {
    %c0 = arith.constant 0 : index
    %c0_0 = arith.constant 0 : index
    %c0_1 = arith.constant 0 : index
    %0 = vector.load %arg1[%c0, %c0_0, %c0_1] : memref<1x8x32xf32, #tpu.memory_space<vmem>>, vector<1x8x32xf32>
    %c0_2 = arith.constant 0 : index
    %c0_3 = arith.constant 0 : index
    %c0_4 = arith.constant 0 : index
    %1 = vector.load %arg2[%c0_2, %c0_3, %c0_4] : memref<1x8x8xf32, #tpu.memory_space<vmem>>, vector<1x8x8xf32>
    %2 = arith.truncf %1 : vector<1x8x8xf32> to vector<1x8x8xbf16>
    %c0_5 = arith.constant 0 : index
    %c0_6 = arith.constant 0 : index
    %3 = vector.load %arg3[%c0_5, %c0_6] : memref<1x32xf32, #tpu.memory_space<vmem>>, vector<1x32xf32>
    %4 = vector.shape_cast %3 : vector<1x32xf32> to vector<32xf32>
    %c0_7 = arith.constant 0 : index
    %c0_8 = arith.constant 0 : index
    %5 = vector.load %arg4[%c0_7, %c0_8] : memref<1x32xf32, #tpu.memory_space<vmem>>, vector<1x32xf32>
    %6 = vector.shape_cast %5 : vector<1x32xf32> to vector<32xf32>
    %cst = arith.constant dense<0.000000e+00> : vector<1x8xf32>
    %7 = vector.multi_reduction <add>, %0, %cst [2] : vector<1x8x32xf32> to vector<1x8xf32>
    %8 = vector.shape_cast %7 : vector<1x8xf32> to vector<1x8x1xf32>
    %cst_9 = arith.constant 3.200000e+01 : f32
    %9 = vector.broadcast %cst_9 : f32 to vector<1x8x1xf32>
    %10 = arith.divf %8, %9 : vector<1x8x1xf32>
    %11 = arith.mulf %0, %0 : vector<1x8x32xf32>
    %cst_10 = arith.constant dense<0.000000e+00> : vector<1x8xf32>
    %12 = vector.multi_reduction <add>, %11, %cst_10 [2] : vector<1x8x32xf32> to vector<1x8xf32>
    %13 = vector.shape_cast %12 : vector<1x8xf32> to vector<1x8x1xf32>
    %cst_11 = arith.constant 3.200000e+01 : f32
    %14 = vector.broadcast %cst_11 : f32 to vector<1x8x1xf32>
    %15 = arith.divf %13, %14 : vector<1x8x1xf32>
    %16 = arith.mulf %10, %10 : vector<1x8x1xf32>
    %17 = arith.subf %15, %16 : vector<1x8x1xf32>
    %cst_12 = arith.constant 0.000000e+00 : f32
    %18 = vector.broadcast %cst_12 : f32 to vector<1x8x1xf32>
    %19 = arith.maximumf %17, %18 : vector<1x8x1xf32>
    %20 = vector.broadcast %10 : vector<1x8x1xf32> to vector<1x8x32xf32>
    %21 = arith.subf %0, %20 : vector<1x8x32xf32>
    %cst_13 = arith.constant 9.99999974E-6 : f32
    %22 = vector.broadcast %cst_13 : f32 to vector<1x8x1xf32>
    %23 = arith.addf %19, %22 : vector<1x8x1xf32>
    %24 = math.rsqrt %23 : vector<1x8x1xf32>
    %25 = vector.broadcast %24 : vector<1x8x1xf32> to vector<1x8x32xf32>
    %26 = arith.mulf %21, %25 : vector<1x8x32xf32>
    %27 = vector.shape_cast %4 : vector<32xf32> to vector<1x1x32xf32>
    %28 = vector.broadcast %27 : vector<1x1x32xf32> to vector<1x8x32xf32>
    %29 = arith.mulf %26, %28 : vector<1x8x32xf32>
    %30 = vector.shape_cast %6 : vector<32xf32> to vector<1x1x32xf32>
    %31 = vector.broadcast %30 : vector<1x1x32xf32> to vector<1x8x32xf32>
    %32 = arith.addf %29, %31 : vector<1x8x32xf32>
    %33 = arith.truncf %32 : vector<1x8x32xf32> to vector<1x8x32xbf16>
    %c0_14 = arith.constant 0 : index
    %c0_15 = arith.constant 0 : index
    %34 = vector.load %arg5[%c0_14, %c0_15] : memref<32x16xf32, #tpu.memory_space<vmem>>, vector<32x16xf32>
    %35 = arith.truncf %34 : vector<32x16xf32> to vector<32x16xbf16>
    "tpu.trace_start"() <{level = 10 : i32, message = "bnd,dh->bnh"}> : () -> ()
    %cst_16 = arith.constant dense<0.000000e+00> : vector<1x8x16xf32>
    %36 = tpu.matmul %33, %35, %cst_16 {dimension_numbers = #tpu.dot_dimension_numbers<[2], [0], [0, 1], [1], [0, 0, 0, 1, 1, 1], [], []>} : vector<1x8x32xbf16>, vector<32x16xbf16>, vector<1x8x16xf32> -> vector<1x8x16xf32>
    "tpu.trace_stop"() : () -> ()
    %37 = arith.truncf %36 : vector<1x8x16xf32> to vector<1x8x16xbf16>
    "tpu.trace_start"() <{level = 10 : i32, message = "bij,bjh->bih"}> : () -> ()
    %cst_17 = arith.constant dense<0.000000e+00> : vector<1x8x16xf32>
    %38 = tpu.matmul %2, %37, %cst_17 {dimension_numbers = #tpu.dot_dimension_numbers<[2], [1], [1], [2], [0, 0, 0, 1, 1, 2], [0], [0]>} : vector<1x8x8xbf16>, vector<1x8x16xbf16>, vector<1x8x16xf32> -> vector<1x8x16xf32>
    "tpu.trace_stop"() : () -> ()
    %c0_18 = arith.constant 0 : index
    %c0_19 = arith.constant 0 : index
    %39 = vector.load %arg6[%c0_18, %c0_19] : memref<1x16xf32, #tpu.memory_space<vmem>>, vector<1x16xf32>
    %40 = vector.shape_cast %39 : vector<1x16xf32> to vector<16xf32>
    %41 = vector.shape_cast %40 : vector<16xf32> to vector<1x1x16xf32>
    %42 = vector.broadcast %41 : vector<1x1x16xf32> to vector<1x8x16xf32>
    %43 = arith.addf %38, %42 : vector<1x8x16xf32>
    %cst_20 = arith.constant 0.000000e+00 : f32
    %44 = vector.broadcast %cst_20 : f32 to vector<1x8x16xf32>
    %45 = arith.maximumf %43, %44 : vector<1x8x16xf32>
    %c0_21 = arith.constant 0 : index
    %c0_22 = arith.constant 0 : index
    %46 = vector.load %arg7[%c0_21, %c0_22] : memref<1x16xf32, #tpu.memory_space<vmem>>, vector<1x16xf32>
    %47 = vector.shape_cast %46 : vector<1x16xf32> to vector<16xf32>
    %c0_23 = arith.constant 0 : index
    %c0_24 = arith.constant 0 : index
    %48 = vector.load %arg8[%c0_23, %c0_24] : memref<1x16xf32, #tpu.memory_space<vmem>>, vector<1x16xf32>
    %49 = vector.shape_cast %48 : vector<1x16xf32> to vector<16xf32>
    %cst_25 = arith.constant dense<0.000000e+00> : vector<1x8xf32>
    %50 = vector.multi_reduction <add>, %45, %cst_25 [2] : vector<1x8x16xf32> to vector<1x8xf32>
    %51 = vector.shape_cast %50 : vector<1x8xf32> to vector<1x8x1xf32>
    %cst_26 = arith.constant 1.600000e+01 : f32
    %52 = vector.broadcast %cst_26 : f32 to vector<1x8x1xf32>
    %53 = arith.divf %51, %52 : vector<1x8x1xf32>
    %54 = arith.mulf %45, %45 : vector<1x8x16xf32>
    %cst_27 = arith.constant dense<0.000000e+00> : vector<1x8xf32>
    %55 = vector.multi_reduction <add>, %54, %cst_27 [2] : vector<1x8x16xf32> to vector<1x8xf32>
    %56 = vector.shape_cast %55 : vector<1x8xf32> to vector<1x8x1xf32>
    %cst_28 = arith.constant 1.600000e+01 : f32
    %57 = vector.broadcast %cst_28 : f32 to vector<1x8x1xf32>
    %58 = arith.divf %56, %57 : vector<1x8x1xf32>
    %59 = arith.mulf %53, %53 : vector<1x8x1xf32>
    %60 = arith.subf %58, %59 : vector<1x8x1xf32>
    %cst_29 = arith.constant 0.000000e+00 : f32
    %61 = vector.broadcast %cst_29 : f32 to vector<1x8x1xf32>
    %62 = arith.maximumf %60, %61 : vector<1x8x1xf32>
    %63 = vector.broadcast %53 : vector<1x8x1xf32> to vector<1x8x16xf32>
    %64 = arith.subf %45, %63 : vector<1x8x16xf32>
    %cst_30 = arith.constant 9.99999974E-6 : f32
    %65 = vector.broadcast %cst_30 : f32 to vector<1x8x1xf32>
    %66 = arith.addf %62, %65 : vector<1x8x1xf32>
    %67 = math.rsqrt %66 : vector<1x8x1xf32>
    %68 = vector.broadcast %67 : vector<1x8x1xf32> to vector<1x8x16xf32>
    %69 = arith.mulf %64, %68 : vector<1x8x16xf32>
    %70 = vector.shape_cast %47 : vector<16xf32> to vector<1x1x16xf32>
    %71 = vector.broadcast %70 : vector<1x1x16xf32> to vector<1x8x16xf32>
    %72 = arith.mulf %69, %71 : vector<1x8x16xf32>
    %73 = vector.shape_cast %49 : vector<16xf32> to vector<1x1x16xf32>
    %74 = vector.broadcast %73 : vector<1x1x16xf32> to vector<1x8x16xf32>
    %75 = arith.addf %72, %74 : vector<1x8x16xf32>
    %76 = arith.truncf %75 : vector<1x8x16xf32> to vector<1x8x16xbf16>
    %c0_31 = arith.constant 0 : index
    %c0_32 = arith.constant 0 : index
    %77 = vector.load %arg9[%c0_31, %c0_32] : memref<16x128xf32, #tpu.memory_space<vmem>>, vector<16x128xf32>
    %78 = arith.truncf %77 : vector<16x128xf32> to vector<16x128xbf16>
    "tpu.trace_start"() <{level = 10 : i32, message = "bnh,ho->bno"}> : () -> ()
    %cst_33 = arith.constant dense<0.000000e+00> : vector<1x8x128xf32>
    %79 = tpu.matmul %76, %78, %cst_33 {dimension_numbers = #tpu.dot_dimension_numbers<[2], [0], [0, 1], [1], [0, 0, 0, 1, 1, 1], [], []>} : vector<1x8x16xbf16>, vector<16x128xbf16>, vector<1x8x128xf32> -> vector<1x8x128xf32>
    "tpu.trace_stop"() : () -> ()
    %80 = arith.truncf %79 : vector<1x8x128xf32> to vector<1x8x128xbf16>
    "tpu.trace_start"() <{level = 10 : i32, message = "bij,bjo->bio"}> : () -> ()
    %cst_34 = arith.constant dense<0.000000e+00> : vector<1x8x128xf32>
    %81 = tpu.matmul %2, %80, %cst_34 {dimension_numbers = #tpu.dot_dimension_numbers<[2], [1], [1], [2], [0, 0, 0, 1, 1, 2], [0], [0]>} : vector<1x8x8xbf16>, vector<1x8x128xbf16>, vector<1x8x128xf32> -> vector<1x8x128xf32>
    "tpu.trace_stop"() : () -> ()
    %c0_35 = arith.constant 0 : index
    %c0_36 = arith.constant 0 : index
    %82 = vector.load %arg10[%c0_35, %c0_36] : memref<1x128xf32, #tpu.memory_space<vmem>>, vector<1x128xf32>
    %83 = vector.shape_cast %82 : vector<1x128xf32> to vector<128xf32>
    %84 = vector.shape_cast %83 : vector<128xf32> to vector<1x1x128xf32>
    %85 = vector.broadcast %84 : vector<1x1x128xf32> to vector<1x8x128xf32>
    %86 = arith.addf %81, %85 : vector<1x8x128xf32>
    %cst_37 = arith.constant 0.000000e+00 : f32
    %87 = vector.broadcast %cst_37 : f32 to vector<1x8x128xf32>
    %88 = arith.maximumf %86, %87 : vector<1x8x128xf32>
    %c0_38 = arith.constant 0 : index
    %c0_39 = arith.constant 0 : index
    %c0_40 = arith.constant 0 : index
    %89 = vector.load %arg11[%c0_38, %c0_39, %c0_40] : memref<1x8x128xf32, #tpu.memory_space<vmem>>, vector<1x8x128xf32>
    tpu.vector_store %arg11[%c0_38, %c0_39, %c0_40], %88 {strides = array<i32>} : memref<1x8x128xf32, #tpu.memory_space<vmem>>, vector<1x8x128xf32>,
    return
  }
  func.func @transform_0(%arg0: i32) -> (i32, i32, i32) {
    %c0_i32 = arith.constant 0 : i32
    %c0_i32_0 = arith.constant 0 : i32
    %c0_i32_1 = arith.constant 0 : i32
    return %arg0, %c0_i32, %c0_i32_0 : i32, i32, i32
  }
  func.func @transform_1(%arg0: i32) -> (i32, i32, i32) {
    %c0_i32 = arith.constant 0 : i32
    %c0_i32_0 = arith.constant 0 : i32
    %c0_i32_1 = arith.constant 0 : i32
    return %arg0, %c0_i32, %c0_i32_0 : i32, i32, i32
  }
  func.func @transform_2(%arg0: i32) -> (i32, i32) {
    %c0_i32 = arith.constant 0 : i32
    %c0_i32_0 = arith.constant 0 : i32
    %c0_i32_1 = arith.constant 0 : i32
    return %c0_i32, %c0_i32_0 : i32, i32
  }
  func.func @transform_3(%arg0: i32) -> (i32, i32) {
    %c0_i32 = arith.constant 0 : i32
    %c0_i32_0 = arith.constant 0 : i32
    %c0_i32_1 = arith.constant 0 : i32
    return %c0_i32, %c0_i32_0 : i32, i32
  }
  func.func @transform_4(%arg0: i32) -> (i32, i32) {
    %c0_i32 = arith.constant 0 : i32
    %c0_i32_0 = arith.constant 0 : i32
    %c0_i32_1 = arith.constant 0 : i32
    return %c0_i32, %c0_i32_0 : i32, i32
  }
  func.func @transform_5(%arg0: i32) -> (i32, i32) {
    %c0_i32 = arith.constant 0 : i32
    %c0_i32_0 = arith.constant 0 : i32
    %c0_i32_1 = arith.constant 0 : i32
    return %c0_i32, %c0_i32_0 : i32, i32
  }
  func.func @transform_6(%arg0: i32) -> (i32, i32) {
    %c0_i32 = arith.constant 0 : i32
    %c0_i32_0 = arith.constant 0 : i32
    %c0_i32_1 = arith.constant 0 : i32
    return %c0_i32, %c0_i32_0 : i32, i32
  }
  func.func @transform_7(%arg0: i32) -> (i32, i32) {
    %c0_i32 = arith.constant 0 : i32
    %c0_i32_0 = arith.constant 0 : i32
    %c0_i32_1 = arith.constant 0 : i32
    return %c0_i32, %c0_i32_0 : i32, i32
  }
  func.func @transform_8(%arg0: i32) -> (i32, i32) {
    %c0_i32 = arith.constant 0 : i32
    %c0_i32_0 = arith.constant 0 : i32
    %c0_i32_1 = arith.constant 0 : i32
    return %c0_i32, %c0_i32_0 : i32, i32
  }
  func.func @transform_9(%arg0: i32) -> (i32, i32) {
    %c0_i32 = arith.constant 0 : i32
    %c0_i32_0 = arith.constant 0 : i32
    %c0_i32_1 = arith.constant 0 : i32
    return %c0_i32, %c0_i32_0 : i32, i32
  }
  func.func @transform_10(%arg0: i32) -> (i32, i32, i32) {
    %c0_i32 = arith.constant 0 : i32
    %c0_i32_0 = arith.constant 0 : i32
    %c0_i32_1 = arith.constant 0 : i32
    return %arg0, %c0_i32, %c0_i32_0 : i32, i32, i32
  }
}

</mosaic_0001>

<bundles_post_ra>
// kernel: tpu_custom_call.1
= control target key start
LH: loop header
LB: loop body
LE: loop exit
PB: predicated region body
PF: predicated region fallthrough
CT: control target
= control target key end

     0   :  { %s974_s0 = inlined_call_operand.vmem [shape: f32[2,8,32], index: 0, kind: input, shape index: {}]   ;;  %s975_s1 = inlined_call_operand.vmem [shape: f32[2,8,8], index: 1, kind: input, shape index: {}]   ;;  %s976_s2 = inlined_call_operand.vmem [shape: f32[1,32], index: 2, kind: input, shape index: {}]   ;;  %s977_s3 = inlined_call_operand.vmem [shape: f32[1,32], index: 3, kind: input, shape index: {}]   ;;  %s978_s4 = inlined_call_operand.vmem [shape: f32[32,16], index: 4, kind: input, shape index: {}]   ;;  %s979_s5 = inlined_call_operand.vmem [shape: f32[1,16], index: 5, kind: input, shape index: {}]   ;;  %s980_s6 = inlined_call_operand.vmem [shape: f32[1,16], index: 6, kind: input, shape index: {}]   ;;  %s981_s7 = inlined_call_operand.vmem [shape: f32[1,16], index: 7, kind: input, shape index: {}]   ;;  %s982_s8 = inlined_call_operand.vmem [shape: f32[16,128], index: 8, kind: input, shape index: {}]   ;;  %s983_s9 = inlined_call_operand.vmem [shape: f32[1,128], index: 9, kind: input, shape index: {}]   ;;  %s984_s10 = inlined_call_operand.hbm [shape: f32[2,8,128], index: 10, kind: output, shape index: {}]  }
   0x1   :  { %985 = sst [smem:[#allocation5_spill]] %s974_s0 }
   0x2   :  { %986 = sst [smem:[#allocation6_spill]] %s975_s1 }
   0x3   :  { %15 = vsyncpa [#allocation3], 0 }
   0x4   :  { %17 = vsyncpa [#allocation3 + $0x1], 0  ;;  %s833_s13 = smov 0   ;;  %s835_s14 = smov 0  }
   0x5   :  { %s837_s15 = smov 0   ;;  %s839_s16 = smov 0  }
   0x6 LB: > { %s854_s17 = sadd.s32 4294967295, %s774_s16   ;;  %s642_s18 = sadd.s32 4294967294, %s774_s16   ;;  %s774_s16 = sphi %s839_s16, %s994_s16   ;;  %s770_s15 = sphi %s837_s15, %s993_s15   ;;  %s766_s14 = sphi %s835_s14, %s992_s14   ;;  %s762_s13 = sphi %s833_s13, %s991_s13  }
   0x7   : > { %s858_s19 = sadd.s32 1, %s774_s16   ;;  %s250_s20 = sadd.s32 1, %s770_s15 }
   0x8   : > { %s247_s21 = ssub.s32 %s774_s16, %s858_s19  ;;  %p260_p0 = scmp.ne.s32.totalorder %s770_s15, %s766_s14 }
   0x9   : > { %p248_p1 = scmp.eq.s32.totalorder %s247_s21, 0  ;;  %p261_p2 = scmp.eq.s32.totalorder %s854_s17, 1 }
   0xa   : > { %p266_p3 = scmp.ne.s32.totalorder %s766_s14, %s762_s13  ;;  %p267_p4 = scmp.eq.s32.totalorder %s642_s18, 1 }
   0xb   : > { %s869_s22 = scalar_select %p248_p1, %s770_s15, %s250_s20  }
   0xc   : > { %p871_p5 = por %p261_p2, %p260_p0  ;;  %p875_p6 = por %p267_p4, %p266_p3 }
   0xd   : > { %p645_p7 = scmp.ge.s32.totalorder %s774_s16, 1  ;;  %p323_p8 = scmp.lt.s32.totalorder %s774_s16, 3 }
   0xf   : > { %p324_p9 = pnand %p645_p7, %p323_p8 }
  0x10   : > { %p364_p10 = scmp.lt.s32.totalorder (!%p324_p9), %s854_s17, 1  ;;  %s989_s0 = sld [smem:[#allocation5_spill]] (!%p324_p9) }
  0x11   : > { %327 = sbr.rel (%p324_p9) target bundleno = 885 (0x375), region = 60  ;;  %s990_s1 = sld [smem:[#allocation6_spill]] (!%p324_p9) }
  0x12   : > { %s654_s28 = sshll.u32 (!%p324_p9), %s854_s17, 3 }
  0x13   : > { %s566_s11 = scalar_lea.hbm (!%p324_p9), %s984_s10, %s654_s28  ;;  %s732_s28 = scalar_lea.hbm (!%p324_p9), %s984_s10, 16 }
  0x14   : > { %s570_s20 = sshll.u32 (!%p324_p9), %s566_s11, 4  ;;  %s571_s20 = int_to_ptr.hbm [resolvable:$true] %s570_s20 }
  0x16   : > { %s883_s25 = scalar_select %p364_p10, %s854_s17, 1  ;;  %vm378_vm0 = vcmask 261120   ;;  %v776_v4 = vmov 32.0   ;;  %v422_v11 = vld [vmem:[%s978_s4 + $0x10] sm:$0xff]  ;;  %v423_v12 = vld [vmem:[%s978_s4 + $0x18] sm:$0xff]  ;;  %v420_v13 = vld [vmem:[%s978_s4] sm:$0xff] }
  0x17   : > { %704 = vrcp.f32 %v776_v4  ;;  %v425_v14 = vpack.c.bf16 %v423_v12, %v422_v11  ;;  %v421_v15 = vld [vmem:[%s978_s4 + $0x8] sm:$0xff]  ;;  %v698_v32 = vld [vmem:[%s976_s2] ss:$0 sm:$0xff]  ;;  %vm451_vm5 = vcmask 1043456   ;;  %vm447_vm6 = vcmask 64512   ;;  %s726_s17 = sshra.s32 %s571_s20, 4  ;;  %s727_s17 = int_to_ptr.hbm [resolvable:$true] %s726_s17 }
  0x18   : > { %s647_s26 = sshll.u32 %s883_s25, 3  ;;  %v424_v17 = vpack.c.bf16 %v421_v15, %v420_v13  ;;  %v699_v35 = vld [vmem:[%s977_s3] ss:$0 sm:$0xff]  ;;  %vm471_vm7 = vcmask 130048   ;;  %v777_v53 = vmov 16.0   ;;  %v514_v61 = vld [vmem:[%s982_s8 + $0x8] sm:$0xff]  ;;  %p733_p0 = scmp.lt.s32.totalorder %s727_s17, %s984_s10 }
  0x19   : > { %s367_s29 = scalar_lea.vmem %s989_s0, %s647_s26  ;;  %435 = vmatpush.bf16.msra.mxu0 %v425_v14  ;;  %s371_s21 = scalar_lea.vmem %s990_s1, %s647_s26  ;;  %v700_v45 = vld [vmem:[%s979_s5] ss:$0 sm:$0xff] }
  0x1a   : > { %v373_v0 = vld [vmem:[%s367_s29] sm:$0xff]  ;;  %s728_s1 = scalar_lea.hbm %s727_s17, 8 }
  0x1b   : > { %v379_v1 = vsel %vm378_vm0, %v373_v0, 0.0  ;;  %v390_v2 = vmul.f32 %v373_v0, %v373_v0  ;;  %v374_v40 = vld [vmem:[%s371_s21] sm:$0xff]  ;;  %s361_s21 = sand.u32 1, %s766_s14   ;;  %p729_p11 = scmp.ne.s32.totalorder %s727_s17, %s728_s1 }
  0x1c   : > { %380 = vadd.xlane.f32.xlu0 %v379_v1  ;;  %v375_v43 = vpack.c.bf16 %v374_v40, %v374_v40  ;;  %v513_v60 = vld [vmem:[%s982_s8] sm:$0xff]  ;;  %s646_s27 = sshll.u32 %s361_s21, 3  ;;  %s556_s0 = scalar_lea.sflag [#allocation3], %s361_s21 }
  0x1d   : > { %v391_v3 = vsel %vm378_vm0, %v390_v2, 0.0  ;;  %v705_v5 = vpop.eup %704  ;;  %436 = vmatpush.bf16.msra.mxu0 %v424_v17  ;;  %v515_v62 = vpack.c.bf16 %v514_v61, %v513_v60  ;;  %v701_v14 = vld [vmem:[%s980_s6] ss:$0 sm:$0xff]  ;;  %s363_s12 = scalar_lea.vmem [#allocation2], %s646_s27  ;;  %p730_p12 = pnand %p729_p11, %p871_p5 }
  0x1e   : > { %v383_v6 = vmul.f32 32.0, %v705_v5  ;;  %vm387_vm1 = vweird.f32 %v705_v5  ;;  %v702_v17 = vld [vmem:[%s981_s7] ss:$0 sm:$0xff]  ;;  %s568_s18 = sshll.u32 %s363_s12, 4  ;;  %p734_p1 = scmp.lt.s32.totalorder %s732_s28, %s728_s1  ;;  %s569_s18 = int_to_ptr.vmem [resolvable:$true] %s568_s18 }
  0x1f   : > { %526 = vmatpush.bf16.msra.mxu2 %v515_v62  ;;  %p731_p13 = pneg %p730_p12 }
  0x20   : > { %v384_v7 = vsub.f32 1.0, %v383_v6  ;;  %p735_p2 = por %p734_p1, %p733_p0 }
  0x22   : > { %v385_v8 = vmul.f32 %v705_v5, %v384_v7  ;;  %p736_p3 = pnand %p735_p2, %p731_p13 }
  0x24   : > { %392 = vadd.xlane.f32.xlu0 %v391_v3  ;;  %v386_v9 = vadd.f32 %v705_v5, %v385_v8 }
  0x26   : > { %v388_v16 = vsel %vm387_vm1, %v705_v5, %v386_v9 }
  0x8f   : > { %v381_v10 = vpop.xlane.xlu0 %380 }
  0x90   : > { %v389_v18 = vmul.f32 %v388_v16, %v381_v10 }
  0x92   : > { %v395_v20 = vmul.f32 %v389_v18, %v389_v18  ;;  %v398_v31 = vsub.f32 %v373_v0, %v389_v18 }
  0x97   : > { %v393_v19 = vpop.xlane.xlu0 %392 }
  0x98   : > { %v394_v21 = vmul.f32 %v393_v19, %v388_v16 }
  0x9a   : > { %v396_v22 = vsub.f32 %v394_v21, %v395_v20 }
  0x9c   : > { %v397_v23 = vmax.f32 %v396_v22, 0.0 }
  0x9e   : > { %v399_v24 = vadd.f32 1e-05, %v397_v23 }
  0xa0   : > { %706 = vrsqrt.f32 %v399_v24  ;;  %vm406_vm3 = vweird.f32 %v399_v24 }
  0xa1   : > { %708 = vrcp.f32 %v777_v53 }
  0xa6   : > { %v707_v25 = vpop.eup %706 }
  0xa7   : > { %v401_v26 = vmul.f32 %v707_v25, %v399_v24  ;;  %vm407_vm2 = vweird.f32 %v707_v25  ;;  %v709_v54 = vpop.eup %708 }
  0xa8   : > { %vm408_vm4 = vmor %vm406_vm3, %vm407_vm2  ;;  %v476_v55 = vmul.f32 16.0, %v709_v54  ;;  %vm480_vm8 = vweird.f32 %v709_v54 }
  0xa9   : > { %v402_v27 = vmul.f32 %v707_v25, %v401_v26 }
  0xaa   : > { %v477_v56 = vsub.f32 1.0, %v476_v55 }
  0xab   : > { %v403_v28 = vmul.f32 0.5, %v402_v27 }
  0xac   : > { %v478_v57 = vmul.f32 %v709_v54, %v477_v56 }
  0xad   : > { %v404_v29 = vsub.f32 1.5, %v403_v28 }
  0xae   : > { %v479_v58 = vadd.f32 %v709_v54, %v478_v57 }
  0xaf   : > { %v405_v30 = vmul.f32 %v707_v25, %v404_v29 }
  0xb0   : > { %v481_v63 = vsel %vm480_vm8, %v709_v54, %v479_v58 }
  0xb1   : > { %v409_v33 = vsel %vm408_vm4, %v707_v25, %v405_v30  ;;  %v703_v25 = vld [vmem:[%s983_s9] ss:$0 sm:$0xff] }
  0xb2   : > { %v410_v34 = vmul.f32 %v409_v33, %v398_v31 }
  0xb4   : > { %v414_v36 = vmul.f32 %v698_v32, %v410_v34 }
  0xb6   : > { %v418_v37 = vadd.f32 %v699_v35, %v414_v36 }
  0xb8   : > { %v419_v38 = vpack.c.bf16 %v418_v37, %v418_v37 }
  0xba   : > { %649 = vmatmul.msk.bf16.vlgmr.msra.gmra.mxu0 %vm378_vm0, %v419_v38 }
 0x137   : > { %v438_v39 = vpop.f32.mrf.mxu0 }
 0x138   : > { %v442_v41 = vpack.c.bf16 %v438_v39, %v438_v39 }
 0x13a   : > { %v453_v42 = vsel %vm451_vm5, %v442_v41, 0 }
 0x13b   : > { %462 = vmatpush.bf16.msra.mxu1 %v453_v42 }
 0x13e   : > { %650 = vmatmul.msk.bf16.vlgmr.msra.gmra.mxu1 %vm447_vm6, %v375_v43 }
 0x13f   : > { %v440_v44 = vpop.f32.mrf.mxu0 }
 0x1bb   : > { %v464_v46 = vpop.f32.mrf.mxu1 }
 0x1bc   : > { %v465_v47 = vadd.f32 %v700_v45, %v464_v46 }
 0x1be   : > { %v468_v48 = vmax.f32 %v465_v47, 0.0 }
 0x1c0   : > { %v472_v49 = vsel %vm471_vm7, %v468_v48, 0.0  ;;  %v483_v51 = vmul.f32 %v468_v48, %v468_v48 }
 0x1c1   : > { %473 = vadd.xlane.f32.xlu1 %v472_v49 }
 0x1c2   : > { %v484_v52 = vsel %vm471_vm7, %v483_v51, 0.0 }
 0x1c3   : > { %v466_v50 = vpop.f32.mrf.mxu1 }
 0x1c9   : > { %485 = vadd.xlane.f32.xlu1 %v484_v52 }
 0x234   : > { %v474_v59 = vpop.xlane.xlu1 %473 }
 0x235   : > { %v482_v0 = vmul.f32 %v481_v63, %v474_v59 }
 0x237   : > { %v488_v2 = vmul.f32 %v482_v0, %v482_v0  ;;  %v491_v13 = vsub.f32 %v468_v48, %v482_v0 }
 0x23c   : > { %v486_v1 = vpop.xlane.xlu1 %485 }
 0x23d   : > { %v487_v3 = vmul.f32 %v486_v1, %v481_v63 }
 0x23f   : > { %v489_v4 = vsub.f32 %v487_v3, %v488_v2 }
 0x241   : > { %v490_v5 = vmax.f32 %v489_v4, 0.0 }
 0x243   : > { %v492_v6 = vadd.f32 1e-05, %v490_v5 }
 0x245   : > { %710 = vrsqrt.f32 %v492_v6  ;;  %vm499_vm10 = vweird.f32 %v492_v6 }
 0x24b   : > { %v711_v7 = vpop.eup %710 }
 0x24c   : > { %v494_v8 = vmul.f32 %v711_v7, %v492_v6  ;;  %vm500_vm9 = vweird.f32 %v711_v7 }
 0x24d   : > { %vm501_vm11 = vmor %vm499_vm10, %vm500_vm9 }
 0x24e   : > { %v495_v9 = vmul.f32 %v711_v7, %v494_v8 }
 0x250   : > { %v496_v10 = vmul.f32 0.5, %v495_v9 }
 0x252   : > { %v497_v11 = vsub.f32 1.5, %v496_v10 }
 0x254   : > { %v498_v12 = vmul.f32 %v711_v7, %v497_v11 }
 0x256   : > { %v502_v15 = vsel %vm501_vm11, %v711_v7, %v498_v12 }
 0x257   : > { %v503_v16 = vmul.f32 %v502_v15, %v491_v13 }
 0x259   : > { %v507_v18 = vmul.f32 %v701_v14, %v503_v16 }
 0x25b   : > { %v511_v19 = vadd.f32 %v702_v17, %v507_v18 }
 0x25d   : > { %v512_v20 = vpack.c.bf16 %v511_v19, %v511_v19 }
 0x25f   : > { %651 = vmatmul.msk.bf16.vlgmr.msra.gmra.mxu2 %vm471_vm7, %v512_v20 }
 0x2e2   : > { %v528_v21 = vpop.f32.mrf.mxu2 }
 0x2e3   : > { %v532_v22 = vpack.c.bf16 %v528_v21, %v528_v21 }
 0x2e5   : > { %v538_v23 = vsel %vm451_vm5, %v532_v22, 0 }
 0x2e6   : > { %547 = vmatpush.bf16.msra.mxu3 %v538_v23 }
 0x2e9   : > { %652 = vmatmul.msk.bf16.vlgmr.msra.gmra.mxu3 %vm447_vm6, %v375_v43 }
 0x2ea   : > { %v530_v24 = vpop.f32.mrf.mxu2 }
 0x36c   : > { %v549_v26 = vpop.f32.mrf.mxu3 }
 0x36d   : > { %v550_v27 = vadd.f32 %v703_v25, %v549_v26 }
 0x36f   : > { %v553_v28 = vmax.f32 %v550_v27, 0.0 }
 0x371   : > { %554 = vst [vmem:[%s363_s12] sm:$0xff] %v553_v28 }
 0x372   : > { %739 = shalt.err (!%p736_p3)
}
 0x373   : > { %657 = dma.vmem_to_hbm [thread:$0]  (%p871_p5), %s569_s18, 128, %s571_s20, %s556_s0  }
 0x374   : > { %v551_v29 = vpop.f32.mrf.mxu3 }
 0x375 PF: > { %p663_p4 = scmp.ge.s32.totalorder %s774_s16, 2  ;;  %s582_s21 = sand.u32 1, %s762_s13  }
 0x376   : > { %s583_s30 = scalar_lea.sflag [#allocation3], %s582_s21 }
 0x377   : > { %p660_p7 = pnand %p663_p4, %p875_p6 }
 0x379   : > { %p661_p8 = pneg %p660_p7 }
 0x37b   : > { %757 = dma.done.wait (%p661_p8), %s583_s30, 128  }
 0x37c   : > { %759 = vsyncadd (%p661_p8), %s583_s30, 4294967168  ;;  %p20_p9 = scmp.ge.s32.totalorder %s858_s19, 4   ;;  %s991_s13 = smov %s766_s14 }
 0x37d   : > { %s992_s14 = smov %s770_s15  ;;  %s993_s15 = smov %s869_s22 }
 0x37e   : > { %s994_s16 = smov %s858_s19  ;;  %22 = sbr.rel (!%p20_p9) target bundleno = 6 (0x6), region = 98 }
 0x383   :  { %589 = vsyncpa [#allocation3], 1 }
 0x384   :  { %591 = vsyncpa [#allocation3 + $0x1], 1 }

// kernel: tpu_custom_call.1
= control target key start
LH: loop header
LB: loop body
LE: loop exit
PB: predicated region body
PF: predicated region fallthrough
CT: control target
= control target key end

     0   :  { %s974_s0 = inlined_call_operand.vmem [shape: f32[2,8,32], index: 0, kind: input, shape index: {}]   ;;  %s975_s1 = inlined_call_operand.vmem [shape: f32[2,8,8], index: 1, kind: input, shape index: {}]   ;;  %s976_s2 = inlined_call_operand.vmem [shape: f32[1,32], index: 2, kind: input, shape index: {}]   ;;  %s977_s3 = inlined_call_operand.vmem [shape: f32[1,32], index: 3, kind: input, shape index: {}]   ;;  %s978_s4 = inlined_call_operand.vmem [shape: f32[32,16], index: 4, kind: input, shape index: {}]   ;;  %s979_s5 = inlined_call_operand.vmem [shape: f32[1,16], index: 5, kind: input, shape index: {}]   ;;  %s980_s6 = inlined_call_operand.vmem [shape: f32[1,16], index: 6, kind: input, shape index: {}]   ;;  %s981_s7 = inlined_call_operand.vmem [shape: f32[1,16], index: 7, kind: input, shape index: {}]   ;;  %s982_s8 = inlined_call_operand.vmem [shape: f32[16,128], index: 8, kind: input, shape index: {}]   ;;  %s983_s9 = inlined_call_operand.vmem [shape: f32[1,128], index: 9, kind: input, shape index: {}]   ;;  %s984_s10 = inlined_call_operand.hbm [shape: f32[2,8,128], index: 10, kind: output, shape index: {}]  }
   0x1   :  { %985 = sst [smem:[#allocation5_spill]] %s974_s0 }
   0x2   :  { %986 = sst [smem:[#allocation6_spill]] %s975_s1 }
   0x3   :  { %15 = vsyncpa [#allocation3], 0 }
   0x4   :  { %17 = vsyncpa [#allocation3 + $0x1], 0  ;;  %s833_s13 = smov 0   ;;  %s835_s14 = smov 0  }
   0x5   :  { %s837_s15 = smov 0   ;;  %s839_s16 = smov 0  }
   0x6 LB: > { %s854_s17 = sadd.s32 4294967295, %s774_s16   ;;  %s642_s18 = sadd.s32 4294967294, %s774_s16   ;;  %s774_s16 = sphi %s839_s16, %s994_s16   ;;  %s770_s15 = sphi %s837_s15, %s993_s15   ;;  %s766_s14 = sphi %s835_s14, %s992_s14   ;;  %s762_s13 = sphi %s833_s13, %s991_s13  }
   0x7   : > { %s858_s19 = sadd.s32 1, %s774_s16   ;;  %s250_s20 = sadd.s32 1, %s770_s15 }
   0x8   : > { %s247_s21 = ssub.s32 %s774_s16, %s858_s19  ;;  %p260_p0 = scmp.ne.s32.totalorder %s770_s15, %s766_s14 }
   0x9   : > { %p248_p1 = scmp.eq.s32.totalorder %s247_s21, 0  ;;  %p261_p2 = scmp.eq.s32.totalorder %s854_s17, 1 }
   0xa   : > { %p266_p3 = scmp.ne.s32.totalorder %s766_s14, %s762_s13  ;;  %p267_p4 = scmp.eq.s32.totalorder %s642_s18, 1 }
   0xb   : > { %s869_s22 = scalar_select %p248_p1, %s770_s15, %s250_s20  }
   0xc   : > { %p871_p5 = por %p261_p2, %p260_p0  ;;  %p875_p6 = por %p267_p4, %p266_p3 }
   0xd   : > { %p645_p7 = scmp.ge.s32.totalorder %s774_s16, 1  ;;  %p323_p8 = scmp.lt.s32.totalorder %s774_s16, 3 }
   0xf   : > { %p324_p9 = pnand %p645_p7, %p323_p8 }
  0x10   : > { %p364_p10 = scmp.lt.s32.totalorder (!%p324_p9), %s854_s17, 1  ;;  %s989_s0 = sld [smem:[#allocation5_spill]] (!%p324_p9) }
  0x11   : > { %327 = sbr.rel (%p324_p9) target bundleno = 885 (0x375), region = 60  ;;  %s990_s1 = sld [smem:[#allocation6_spill]] (!%p324_p9) }
  0x12   : > { %s654_s28 = sshll.u32 (!%p324_p9), %s854_s17, 3 }
  0x13   : > { %s566_s11 = scalar_lea.hbm (!%p324_p9), %s984_s10, %s654_s28  ;;  %s732_s28 = scalar_lea.hbm (!%p324_p9), %s984_s10, 16 }
  0x14   : > { %s570_s20 = sshll.u32 (!%p324_p9), %s566_s11, 4  ;;  %s571_s20 = int_to_ptr.hbm [resolvable:$true] %s570_s20 }
  0x16   : > { %s883_s25 = scalar_select %p364_p10, %s854_s17, 1  ;;  %vm378_vm0 = vcmask 261120   ;;  %v776_v4 = vmov 32.0   ;;  %v422_v11 = vld [vmem:[%s978_s4 + $0x10] sm:$0xff]  ;;  %v423_v12 = vld [vmem:[%s978_s4 + $0x18] sm:$0xff]  ;;  %v420_v13 = vld [vmem:[%s978_s4] sm:$0xff] }
  0x17   : > { %704 = vrcp.f32 %v776_v4  ;;  %v425_v14 = vpack.c.bf16 %v423_v12, %v422_v11  ;;  %v421_v15 = vld [vmem:[%s978_s4 + $0x8] sm:$0xff]  ;;  %v698_v32 = vld [vmem:[%s976_s2] ss:$0 sm:$0xff]  ;;  %vm451_vm5 = vcmask 1043456   ;;  %vm447_vm6 = vcmask 64512   ;;  %s726_s17 = sshra.s32 %s571_s20, 4  ;;  %s727_s17 = int_to_ptr.hbm [resolvable:$true] %s726_s17 }
  0x18   : > { %s647_s26 = sshll.u32 %s883_s25, 3  ;;  %v424_v17 = vpack.c.bf16 %v421_v15, %v420_v13  ;;  %v699_v35 = vld [vmem:[%s977_s3] ss:$0 sm:$0xff]  ;;  %vm471_vm7 = vcmask 130048   ;;  %v777_v53 = vmov 16.0   ;;  %v514_v61 = vld [vmem:[%s982_s8 + $0x8] sm:$0xff]  ;;  %p733_p0 = scmp.lt.s32.totalorder %s727_s17, %s984_s10 }
  0x19   : > { %s367_s29 = scalar_lea.vmem %s989_s0, %s647_s26  ;;  %435 = vmatpush.bf16.msra.mxu0 %v425_v14  ;;  %s371_s21 = scalar_lea.vmem %s990_s1, %s647_s26  ;;  %v700_v45 = vld [vmem:[%s979_s5] ss:$0 sm:$0xff] }
  0x1a   : > { %v373_v0 = vld [vmem:[%s367_s29] sm:$0xff]  ;;  %s728_s1 = scalar_lea.hbm %s727_s17, 8 }
  0x1b   : > { %v379_v1 = vsel %vm378_vm0, %v373_v0, 0.0  ;;  %v390_v2 = vmul.f32 %v373_v0, %v373_v0  ;;  %v374_v40 = vld [vmem:[%s371_s21] sm:$0xff]  ;;  %s361_s21 = sand.u32 1, %s766_s14   ;;  %p729_p11 = scmp.ne.s32.totalorder %s727_s17, %s728_s1 }
  0x1c   : > { %380 = vadd.xlane.f32.xlu0 %v379_v1  ;;  %v375_v43 = vpack.c.bf16 %v374_v40, %v374_v40  ;;  %v513_v60 = vld [vmem:[%s982_s8] sm:$0xff]  ;;  %s646_s27 = sshll.u32 %s361_s21, 3  ;;  %s556_s0 = scalar_lea.sflag [#allocation3], %s361_s21 }
  0x1d   : > { %v391_v3 = vsel %vm378_vm0, %v390_v2, 0.0  ;;  %v705_v5 = vpop.eup %704  ;;  %436 = vmatpush.bf16.msra.mxu0 %v424_v17  ;;  %v515_v62 = vpack.c.bf16 %v514_v61, %v513_v60  ;;  %v701_v14 = vld [vmem:[%s980_s6] ss:$0 sm:$0xff]  ;;  %s363_s12 = scalar_lea.vmem [#allocation2], %s646_s27  ;;  %p730_p12 = pnand %p729_p11, %p871_p5 }
  0x1e   : > { %v383_v6 = vmul.f32 32.0, %v705_v5  ;;  %vm387_vm1 = vweird.f32 %v705_v5  ;;  %v702_v17 = vld [vmem:[%s981_s7] ss:$0 sm:$0xff]  ;;  %s568_s18 = sshll.u32 %s363_s12, 4  ;;  %p734_p1 = scmp.lt.s32.totalorder %s732_s28, %s728_s1  ;;  %s569_s18 = int_to_ptr.vmem [resolvable:$true] %s568_s18 }
  0x1f   : > { %526 = vmatpush.bf16.msra.mxu2 %v515_v62  ;;  %p731_p13 = pneg %p730_p12 }
  0x20   : > { %v384_v7 = vsub.f32 1.0, %v383_v6  ;;  %p735_p2 = por %p734_p1, %p733_p0 }
  0x22   : > { %v385_v8 = vmul.f32 %v705_v5, %v384_v7  ;;  %p736_p3 = pnand %p735_p2, %p731_p13 }
  0x24   : > { %392 = vadd.xlane.f32.xlu0 %v391_v3  ;;  %v386_v9 = vadd.f32 %v705_v5, %v385_v8 }
  0x26   : > { %v388_v16 = vsel %vm387_vm1, %v705_v5, %v386_v9 }
  0x8f   : > { %v381_v10 = vpop.xlane.xlu0 %380 }
  0x90   : > { %v389_v18 = vmul.f32 %v388_v16, %v381_v10 }
  0x92   : > { %v395_v20 = vmul.f32 %v389_v18, %v389_v18  ;;  %v398_v31 = vsub.f32 %v373_v0, %v389_v18 }
  0x97   : > { %v393_v19 = vpop.xlane.xlu0 %392 }
  0x98   : > { %v394_v21 = vmul.f32 %v393_v19, %v388_v16 }
  0x9a   : > { %v396_v22 = vsub.f32 %v394_v21, %v395_v20 }
  0x9c   : > { %v397_v23 = vmax.f32 %v396_v22, 0.0 }
  0x9e   : > { %v399_v24 = vadd.f32 1e-05, %v397_v23 }
  0xa0   : > { %706 = vrsqrt.f32 %v399_v24  ;;  %vm406_vm3 = vweird.f32 %v399_v24 }
  0xa1   : > { %708 = vrcp.f32 %v777_v53 }
  0xa6   : > { %v707_v25 = vpop.eup %706 }
  0xa7   : > { %v401_v26 = vmul.f32 %v707_v25, %v399_v24  ;;  %vm407_vm2 = vweird.f32 %v707_v25  ;;  %v709_v54 = vpop.eup %708 }
  0xa8   : > { %vm408_vm4 = vmor %vm406_vm3, %vm407_vm2  ;;  %v476_v55 = vmul.f32 16.0, %v709_v54  ;;  %vm480_vm8 = vweird.f32 %v709_v54 }
  0xa9   : > { %v402_v27 = vmul.f32 %v707_v25, %v401_v26 }
  0xaa   : > { %v477_v56 = vsub.f32 1.0, %v476_v55 }
  0xab   : > { %v403_v28 = vmul.f32 0.5, %v402_v27 }
  0xac   : > { %v478_v57 = vmul.f32 %v709_v54, %v477_v56 }
  0xad   : > { %v404_v29 = vsub.f32 1.5, %v403_v28 }
  0xae   : > { %v479_v58 = vadd.f32 %v709_v54, %v478_v57 }
  0xaf   : > { %v405_v30 = vmul.f32 %v707_v25, %v404_v29 }
  0xb0   : > { %v481_v63 = vsel %vm480_vm8, %v709_v54, %v479_v58 }
  0xb1   : > { %v409_v33 = vsel %vm408_vm4, %v707_v25, %v405_v30  ;;  %v703_v25 = vld [vmem:[%s983_s9] ss:$0 sm:$0xff] }
  0xb2   : > { %v410_v34 = vmul.f32 %v409_v33, %v398_v31 }
  0xb4   : > { %v414_v36 = vmul.f32 %v698_v32, %v410_v34 }
  0xb6   : > { %v418_v37 = vadd.f32 %v699_v35, %v414_v36 }
  0xb8   : > { %v419_v38 = vpack.c.bf16 %v418_v37, %v418_v37 }
  0xba   : > { %649 = vmatmul.msk.bf16.vlgmr.msra.gmra.mxu0 %vm378_vm0, %v419_v38 }
 0x137   : > { %v438_v39 = vpop.f32.mrf.mxu0 }
 0x138   : > { %v442_v41 = vpack.c.bf16 %v438_v39, %v438_v39 }
 0x13a   : > { %v453_v42 = vsel %vm451_vm5, %v442_v41, 0 }
 0x13b   : > { %462 = vmatpush.bf16.msra.mxu1 %v453_v42 }
 0x13e   : > { %650 = vmatmul.msk.bf16.vlgmr.msra.gmra.mxu1 %vm447_vm6, %v375_v43 }
 0x13f   : > { %v440_v44 = vpop.f32.mrf.mxu0 }
 0x1bb   : > { %v464_v46 = vpop.f32.mrf.mxu1 }
 0x1bc   : > { %v465_v47 = vadd.f32 %v700_v45, %v464_v46 }
 0x1be   : > { %v468_v48 = vmax.f32 %v465_v47, 0.0 }
 0x1c0   : > { %v472_v49 = vsel %vm471_vm7, %v468_v48, 0.0  ;;  %v483_v51 = vmul.f32 %v468_v48, %v468_v48 }
 0x1c1   : > { %473 = vadd.xlane.f32.xlu1 %v472_v49 }
 0x1c2   : > { %v484_v52 = vsel %vm471_vm7, %v483_v51, 0.0 }
 0x1c3   : > { %v466_v50 = vpop.f32.mrf.mxu1 }
 0x1c9   : > { %485 = vadd.xlane.f32.xlu1 %v484_v52 }
 0x234   : > { %v474_v59 = vpop.xlane.xlu1 %473 }
 0x235   : > { %v482_v0 = vmul.f32 %v481_v63, %v474_v59 }
 0x237   : > { %v488_v2 = vmul.f32 %v482_v0, %v482_v0  ;;  %v491_v13 = vsub.f32 %v468_v48, %v482_v0 }
 0x23c   : > { %v486_v1 = vpop.xlane.xlu1 %485 }
 0x23d   : > { %v487_v3 = vmul.f32 %v486_v1, %v481_v63 }
 0x23f   : > { %v489_v4 = vsub.f32 %v487_v3, %v488_v2 }
 0x241   : > { %v490_v5 = vmax.f32 %v489_v4, 0.0 }
 0x243   : > { %v492_v6 = vadd.f32 1e-05, %v490_v5 }
 0x245   : > { %710 = vrsqrt.f32 %v492_v6  ;;  %vm499_vm10 = vweird.f32 %v492_v6 }
 0x24b   : > { %v711_v7 = vpop.eup %710 }
 0x24c   : > { %v494_v8 = vmul.f32 %v711_v7, %v492_v6  ;;  %vm500_vm9 = vweird.f32 %v711_v7 }
 0x24d   : > { %vm501_vm11 = vmor %vm499_vm10, %vm500_vm9 }
 0x24e   : > { %v495_v9 = vmul.f32 %v711_v7, %v494_v8 }
 0x250   : > { %v496_v10 = vmul.f32 0.5, %v495_v9 }
 0x252   : > { %v497_v11 = vsub.f32 1.5, %v496_v10 }
 0x254   : > { %v498_v12 = vmul.f32 %v711_v7, %v497_v11 }
 0x256   : > { %v502_v15 = vsel %vm501_vm11, %v711_v7, %v498_v12 }
 0x257   : > { %v503_v16 = vmul.f32 %v502_v15, %v491_v13 }
 0x259   : > { %v507_v18 = vmul.f32 %v701_v14, %v503_v16 }
 0x25b   : > { %v511_v19 = vadd.f32 %v702_v17, %v507_v18 }
 0x25d   : > { %v512_v20 = vpack.c.bf16 %v511_v19, %v511_v19 }
 0x25f   : > { %651 = vmatmul.msk.bf16.vlgmr.msra.gmra.mxu2 %vm471_vm7, %v512_v20 }
 0x2e2   : > { %v528_v21 = vpop.f32.mrf.mxu2 }
 0x2e3   : > { %v532_v22 = vpack.c.bf16 %v528_v21, %v528_v21 }
 0x2e5   : > { %v538_v23 = vsel %vm451_vm5, %v532_v22, 0 }
 0x2e6   : > { %547 = vmatpush.bf16.msra.mxu3 %v538_v23 }
 0x2e9   : > { %652 = vmatmul.msk.bf16.vlgmr.msra.gmra.mxu3 %vm447_vm6, %v375_v43 }
 0x2ea   : > { %v530_v24 = vpop.f32.mrf.mxu2 }
 0x36c   : > { %v549_v26 = vpop.f32.mrf.mxu3 }
 0x36d   : > { %v550_v27 = vadd.f32 %v703_v25, %v549_v26 }
 0x36f   : > { %v553_v28 = vmax.f32 %v550_v27, 0.0 }
 0x371   : > { %554 = vst [vmem:[%s363_s12] sm:$0xff] %v553_v28 }
 0x372   : > { %739 = shalt.err (!%p736_p3)
}
 0x373   : > { %657 = dma.vmem_to_hbm [thread:$0]  (%p871_p5), %s569_s18, 128, %s571_s20, %s556_s0  }
 0x374   : > { %v551_v29 = vpop.f32.mrf.mxu3 }
 0x375 PF: > { %p663_p4 = scmp.ge.s32.totalorder %s774_s16, 2  ;;  %s582_s21 = sand.u32 1, %s762_s13  }
 0x376   : > { %s583_s30 = scalar_lea.sflag [#allocation3], %s582_s21 }
 0x377   : > { %p660_p7 = pnand %p663_p4, %p875_p6 }
 0x379   : > { %p661_p8 = pneg %p660_p7 }
 0x37b   : > { %757 = dma.done.wait (%p661_p8), %s583_s30, 128  }
 0x37c   : > { %759 = vsyncadd (%p661_p8), %s583_s30, 4294967168  ;;  %p20_p9 = scmp.ge.s32.totalorder %s858_s19, 4   ;;  %s991_s13 = smov %s766_s14 }
 0x37d   : > { %s992_s14 = smov %s770_s15  ;;  %s993_s15 = smov %s869_s22 }
 0x37e   : > { %s994_s16 = smov %s858_s19  ;;  %22 = sbr.rel (!%p20_p9) target bundleno = 6 (0x6), region = 98 }
 0x383   :  { %589 = vsyncpa [#allocation3], 1 }
 0x384   :  { %591 = vsyncpa [#allocation3 + $0x1], 1 }

</bundles_post_ra>
